<compile_context>
chip_gen: v6e
topology: v6e:2x2x1
jax: 0.10.0
libtpu: 0.0.40
codegen_flags: <defaults>
</compile_context>

<pallas_src>
import functools

import jax
import jax.numpy as jnp
from jax import lax
from jax.experimental import pallas as pl
from jax.experimental.pallas import tpu as pltpu


_CHUNK = 512               # lanes per inner-loop step (4 f32 vregs per row-group)
_SMALL_S_FALLBACK = 2048   # below this many pixels, plain XLA beats the pipeline


def _round_up(x, m):
    return -(-x // m) * m


def _max_spatial_elems():
    """Largest spatial tile (elements) per grid step, per TPU generation."""
    try:
        kind = jax.devices()[0].device_kind.lower()
    except Exception:  # pragma: no cover - defensive fallback
        kind = ""
    if "v5 lite" in kind or "v5e" in kind or "v5lite" in kind:
        return 64 * 1024          # v5e: 16 MiB scoped-VMEM default -> stay small
    return 128 * 1024             # v6e / v7x: 32 MiB scoped default


def _mrae_band_kernel(out_ref, tgt_ref, met_ref, *,
                      bands, total_s, s_tile, chunk, n_chunks, unroll, inv_n):
    """Accumulate per-band sums of |o/t - 2| over the spatial axis.

    out_ref, tgt_ref : (band_tile, s_tile) tiles of the flattened (31, H*W) arrays
    met_ref          : (band_tile, 1) f32 output block, resident across the
                       spatial (reduction) grid axis; scaled to a mean on the
                       last spatial step.
    """
    i = pl.program_id(0)          # band-group index   (parallel)
    k = pl.program_id(1)          # spatial-tile index (arbitrary / reduction)
    band_tile = met_ref.shape[0]

    @pl.when(k == 0)
    def _():
        met_ref[...] = jnp.zeros_like(met_ref)

    # Loop-invariant masks / iotas (hoisted out of the chunk loop).
    row_ok = (i * band_tile
              + lax.broadcasted_iota(jnp.int32, (band_tile, chunk), 0)) < bands
    col_iota = lax.broadcasted_iota(jnp.int32, (band_tile, chunk), 1)
    col_base = k * s_tile

    def body(c, acc):
        off = pl.multiple_of(c * chunk, chunk)
        o = out_ref[:, pl.ds(off, chunk)].astype(jnp.float32)
        t = tgt_ref[:, pl.ds(off, chunk)].astype(jnp.float32)
        valid = row_ok & ((col_base + off + col_iota) < total_s)
        # Guard the divide: out-of-bounds lanes hold unspecified data.
        t_safe = jnp.where(valid, t, 1.0)
        # |o - 2t| / t == |o/t - 2|   (exact divide kept for accuracy)
        err = jnp.where(valid, jnp.abs(o / t_safe - 2.0), 0.0)
        return acc + err

    acc = lax.fori_loop(0, n_chunks, body,
                        jnp.zeros((band_tile, chunk), jnp.float32),
                        unroll=unroll)

    # Single cross-lane (XLU) reduce per grid step.
    met_ref[...] += jnp.sum(acc, axis=-1, keepdims=True)

    @pl.when(k == pl.num_programs(1) - 1)
    def _():
        met_ref[...] = met_ref[...] * inv_n


def loss_mrae_band(output, target):
    """JAX/Pallas equivalent of Loss_MRAEBand.forward. Returns (31,) f32."""
    assert target.shape[0] == 1, "batch must be 1"
    assert target.shape[1] == 31, "expects 31 spectral bands"
    assert output.shape == target.shape

    # Squeeze ONLY the batch dim (robust to H==1 or W==1, unlike full squeeze).
    tgt = jnp.squeeze(target, axis=0)       # (31, H, W)
    out = jnp.squeeze(output, axis=0)       # (31, H, W)
    bands, H, W = tgt.shape
    S = H * W

    # Flatten spatial dims -> lane-dense (bands, H*W); contiguous reshape.
    tgt2 = tgt.reshape(bands, S)
    out2 = out.reshape(bands, S)

    # Small-input fast path: pipeline/launch overhead dominates, let XLA do it.
    if S < _SMALL_S_FALLBACK:
        o = out2.astype(jnp.float32)
        t = tgt2.astype(jnp.float32)
        return jnp.mean(jnp.abs(o - t - t) / t, axis=1)

    itemsize = jnp.dtype(tgt.dtype).itemsize
    # 8 sublanes for 32-bit, 16 for 16-bit (packed tile); cap at 16 so >= 2
    # band groups remain on the parallel axis (v7x megacore).
    band_tile = 8 if itemsize >= 4 else 16

    # Spatial tile: multiple of the chunk size, capped per generation.
    s_tile = min(_round_up(S, _CHUNK), _max_spatial_elems())
    n_k = pl.cdiv(S, s_tile)
    n_b = pl.cdiv(bands, band_tile)
    n_chunks = s_tile // _CHUNK
    unroll = min(8, n_chunks)

    kernel = functools.partial(
        _mrae_band_kernel, bands=bands, total_s=S, s_tile=s_tile,
        chunk=_CHUNK, n_chunks=n_chunks, unroll=unroll, inv_n=1.0 / float(S))

    # VMEM: 2 inputs x 2 pipeline buffers of (band_tile, s_tile) plus small
    # in-kernel temporaries (chunked reduction keeps those to a few vregs).
    vmem_limit = int(min(4 * band_tile * s_tile * itemsize + (16 << 20),
                         48 << 20))

    metrics = pl.pallas_call(
        kernel,
        out_shape=jax.ShapeDtypeStruct((bands, 1), jnp.float32),
        grid=(n_b, n_k),
        in_specs=[
            pl.BlockSpec((band_tile, s_tile), lambda i, k: (i, k)),  # output
            pl.BlockSpec((band_tile, s_tile), lambda i, k: (i, k)),  # target
        ],
        # Blocked per-band-group output: shards the band axis across TCs and
        # serves as the f32 accumulator resident across the spatial axis.
        out_specs=pl.BlockSpec((band_tile, 1), lambda i, k: (i, 0)),
        compiler_params=pltpu.CompilerParams(
            dimension_semantics=("parallel", "arbitrary"),
            vmem_limit_bytes=vmem_limit),
        cost_estimate=pl.CostEstimate(
            flops=4 * bands * S,
            transcendentals=0,
            bytes_accessed=2 * bands * S * itemsize + bands * 4),
    )(out2, tgt2)

    return metrics[:, 0]


def _reference(output, target):
    tgt = jnp.squeeze(target, axis=0).astype(jnp.float32)
    out = jnp.squeeze(output, axis=0).astype(jnp.float32)
    err = jnp.abs(out - tgt - tgt) / tgt
    return jnp.mean(err, axis=(1, 2))


if __name__ == "__main__":
    key = jax.random.PRNGKey(0)
    keys = jax.random.split(key, 6)

    def make(ko, kt, H, W):
        # target strictly positive (the loss assumes no division by zero)
        t = jax.random.uniform(kt, (1, 31, H, W), jnp.float32,
                               minval=0.5, maxval=1.5)
        o = jax.random.uniform(ko, (1, 31, H, W), jnp.float32,
                               minval=0.5, maxval=1.5)
        return o, t

    # 1) Pallas path, aligned spatial size.
    o1, t1 = make(keys[0], keys[1], 64, 64)
    m1 = jax.block_until_ready(loss_mrae_band(o1, t1))
    assert m1.shape == (31,)
    assert jnp.allclose(m1, _reference(o1, t1), rtol=1e-5, atol=1e-6), \
        (m1, _reference(o1, t1))

    # 2) Pallas path, ragged spatial size (exercises in-kernel iota masking).
    o2, t2 = make(keys[2], keys[3], 45, 67)
    m2 = jax.block_until_ready(loss_mrae_band(o2, t2))
    assert jnp.allclose(m2, _reference(o2, t2), rtol=1e-5, atol=1e-6), \
        (m2, _reference(o2, t2))

    # 3) Small-input fast path.
    o3, t3 = make(keys[4], keys[5], 16, 16)
    m3 = jax.block_until_ready(loss_mrae_band(o3, t3))
    assert jnp.allclose(m3, _reference(o3, t3), rtol=1e-5, atol=1e-6), \
        (m3, _reference(o3, t3))

    print("KERNEL_OK")
</pallas_src>

<mosaic_0001>
module attributes {stable_mosaic.version = 11 : i64} {
  func.func @_mrae_band_kernel(%arg0: i32, %arg1: i32, %arg2: memref<8x4096xf32, #tpu.memory_space<vmem>>, %arg3: memref<8x4096xf32, #tpu.memory_space<vmem>>, %arg4: memref<8x1xf32, #tpu.memory_space<vmem>>) attributes {dimension_semantics = [#tpu.dimension_semantics<parallel>, #tpu.dimension_semantics<arbitrary>], iteration_bounds = array<i64: 4, 1>, scalar_prefetch = 0 : i64, scratch_operands = 0 : i64, tpu.core_type = #tpu.core_type<tc>, window_params = [{transform_indices = @transform_0, window_bounds = array<i64: 8, 4096>}, {transform_indices = @transform_1, window_bounds = array<i64: 8, 4096>}, {transform_indices = @transform_2, window_bounds = array<i64: 8, 1>}]} {
    %c0_i32 = arith.constant 0 : i32
    %0 = arith.cmpi eq, %arg1, %c0_i32 : i32
    %1 = arith.extui %0 : i1 to i32
    %c0_i32_0 = arith.constant 0 : i32
    %2 = arith.cmpi ne, %1, %c0_i32_0 : i32
    scf.if %2 {
      %cst_64 = arith.constant 0.000000e+00 : f32
      %188 = vector.broadcast %cst_64 : f32 to vector<8x1xf32>
      %c0_65 = arith.constant 0 : index
      %c0_66 = arith.constant 0 : index
      %189 = vector.load %arg4[%c0_65, %c0_66] : memref<8x1xf32, #tpu.memory_space<vmem>>, vector<8x1xf32>
      tpu.vector_store %arg4[%c0_65, %c0_66], %188 {strides = array<i32>} : memref<8x1xf32, #tpu.memory_space<vmem>>, vector<8x1xf32>,
    } else {
    }
    %c8_i32 = arith.constant 8 : i32
    %3 = arith.muli %arg0, %c8_i32 : i32
    %4 = tpu.iota {dimensions = array<i32: 0>} : vector<8x512xi32>
    %5 = vector.broadcast %3 : i32 to vector<8x512xi32>
    %6 = arith.addi %5, %4 : vector<8x512xi32>
    %c31_i32 = arith.constant 31 : i32
    %7 = vector.broadcast %c31_i32 : i32 to vector<8x512xi32>
    %8 = arith.cmpi slt, %6, %7 : vector<8x512xi32>
    %9 = tpu.iota {dimensions = array<i32: 1>} : vector<8x512xi32>
    %c4096_i32 = arith.constant 4096 : i32
    %10 = arith.muli %arg1, %c4096_i32 : i32
    %cst = arith.constant 0.000000e+00 : f32
    %11 = vector.broadcast %cst : f32 to vector<8x512xf32>
    %c0_i32_1 = arith.constant 0 : i32
    %c512_i32 = arith.constant 512 : i32
    %12 = arith.muli %c0_i32_1, %c512_i32 : i32
    %13 = tpu.assume_multiple %12, 512 : i32
    %c0 = arith.constant 0 : index
    %14 = arith.index_cast %13 : i32 to index
    %15 = vector.load %arg2[%c0, %14] : memref<8x4096xf32, #tpu.memory_space<vmem>>, vector<8x512xf32>
    %c0_2 = arith.constant 0 : index
    %16 = arith.index_cast %13 : i32 to index
    %17 = vector.load %arg3[%c0_2, %16] : memref<8x4096xf32, #tpu.memory_space<vmem>>, vector<8x512xf32>
    %18 = arith.addi %10, %13 : i32
    %19 = vector.broadcast %18 : i32 to vector<8x512xi32>
    %20 = arith.addi %19, %9 : vector<8x512xi32>
    %c4096_i32_3 = arith.constant 4096 : i32
    %21 = vector.broadcast %c4096_i32_3 : i32 to vector<8x512xi32>
    %22 = arith.cmpi slt, %20, %21 : vector<8x512xi32>
    %23 = arith.andi %8, %22 : vector<8x512xi1>
    %cst_4 = arith.constant 1.000000e+00 : f32
    %24 = vector.broadcast %cst_4 : f32 to vector<8x512xf32>
    %25 = arith.select %23, %17, %24 : vector<8x512xi1>, vector<8x512xf32>
    %26 = arith.divf %15, %25 : vector<8x512xf32>
    %cst_5 = arith.constant 2.000000e+00 : f32
    %27 = vector.broadcast %cst_5 : f32 to vector<8x512xf32>
    %28 = arith.subf %26, %27 : vector<8x512xf32>
    %29 = math.absf %28 : vector<8x512xf32>
    %cst_6 = arith.constant 0.000000e+00 : f32
    %30 = vector.broadcast %cst_6 : f32 to vector<8x512xf32>
    %31 = arith.select %23, %29, %30 : vector<8x512xi1>, vector<8x512xf32>
    %32 = arith.addf %11, %31 : vector<8x512xf32>
    %c1_i32 = arith.constant 1 : i32
    %c512_i32_7 = arith.constant 512 : i32
    %33 = arith.muli %c1_i32, %c512_i32_7 : i32
    %34 = tpu.assume_multiple %33, 512 : i32
    %c0_8 = arith.constant 0 : index
    %35 = arith.index_cast %34 : i32 to index
    %36 = vector.load %arg2[%c0_8, %35] : memref<8x4096xf32, #tpu.memory_space<vmem>>, vector<8x512xf32>
    %c0_9 = arith.constant 0 : index
    %37 = arith.index_cast %34 : i32 to index
    %38 = vector.load %arg3[%c0_9, %37] : memref<8x4096xf32, #tpu.memory_space<vmem>>, vector<8x512xf32>
    %39 = arith.addi %10, %34 : i32
    %40 = vector.broadcast %39 : i32 to vector<8x512xi32>
    %41 = arith.addi %40, %9 : vector<8x512xi32>
    %c4096_i32_10 = arith.constant 4096 : i32
    %42 = vector.broadcast %c4096_i32_10 : i32 to vector<8x512xi32>
    %43 = arith.cmpi slt, %41, %42 : vector<8x512xi32>
    %44 = arith.andi %8, %43 : vector<8x512xi1>
    %cst_11 = arith.constant 1.000000e+00 : f32
    %45 = vector.broadcast %cst_11 : f32 to vector<8x512xf32>
    %46 = arith.select %44, %38, %45 : vector<8x512xi1>, vector<8x512xf32>
    %47 = arith.divf %36, %46 : vector<8x512xf32>
    %cst_12 = arith.constant 2.000000e+00 : f32
    %48 = vector.broadcast %cst_12 : f32 to vector<8x512xf32>
    %49 = arith.subf %47, %48 : vector<8x512xf32>
    %50 = math.absf %49 : vector<8x512xf32>
    %cst_13 = arith.constant 0.000000e+00 : f32
    %51 = vector.broadcast %cst_13 : f32 to vector<8x512xf32>
    %52 = arith.select %44, %50, %51 : vector<8x512xi1>, vector<8x512xf32>
    %53 = arith.addf %32, %52 : vector<8x512xf32>
    %c2_i32 = arith.constant 2 : i32
    %c512_i32_14 = arith.constant 512 : i32
    %54 = arith.muli %c2_i32, %c512_i32_14 : i32
    %55 = tpu.assume_multiple %54, 512 : i32
    %c0_15 = arith.constant 0 : index
    %56 = arith.index_cast %55 : i32 to index
    %57 = vector.load %arg2[%c0_15, %56] : memref<8x4096xf32, #tpu.memory_space<vmem>>, vector<8x512xf32>
    %c0_16 = arith.constant 0 : index
    %58 = arith.index_cast %55 : i32 to index
    %59 = vector.load %arg3[%c0_16, %58] : memref<8x4096xf32, #tpu.memory_space<vmem>>, vector<8x512xf32>
    %60 = arith.addi %10, %55 : i32
    %61 = vector.broadcast %60 : i32 to vector<8x512xi32>
    %62 = arith.addi %61, %9 : vector<8x512xi32>
    %c4096_i32_17 = arith.constant 4096 : i32
    %63 = vector.broadcast %c4096_i32_17 : i32 to vector<8x512xi32>
    %64 = arith.cmpi slt, %62, %63 : vector<8x512xi32>
    %65 = arith.andi %8, %64 : vector<8x512xi1>
    %cst_18 = arith.constant 1.000000e+00 : f32
    %66 = vector.broadcast %cst_18 : f32 to vector<8x512xf32>
    %67 = arith.select %65, %59, %66 : vector<8x512xi1>, vector<8x512xf32>
    %68 = arith.divf %57, %67 : vector<8x512xf32>
    %cst_19 = arith.constant 2.000000e+00 : f32
    %69 = vector.broadcast %cst_19 : f32 to vector<8x512xf32>
    %70 = arith.subf %68, %69 : vector<8x512xf32>
    %71 = math.absf %70 : vector<8x512xf32>
    %cst_20 = arith.constant 0.000000e+00 : f32
    %72 = vector.broadcast %cst_20 : f32 to vector<8x512xf32>
    %73 = arith.select %65, %71, %72 : vector<8x512xi1>, vector<8x512xf32>
    %74 = arith.addf %53, %73 : vector<8x512xf32>
    %c3_i32 = arith.constant 3 : i32
    %c512_i32_21 = arith.constant 512 : i32
    %75 = arith.muli %c3_i32, %c512_i32_21 : i32
    %76 = tpu.assume_multiple %75, 512 : i32
    %c0_22 = arith.constant 0 : index
    %77 = arith.index_cast %76 : i32 to index
    %78 = vector.load %arg2[%c0_22, %77] : memref<8x4096xf32, #tpu.memory_space<vmem>>, vector<8x512xf32>
    %c0_23 = arith.constant 0 : index
    %79 = arith.index_cast %76 : i32 to index
    %80 = vector.load %arg3[%c0_23, %79] : memref<8x4096xf32, #tpu.memory_space<vmem>>, vector<8x512xf32>
    %81 = arith.addi %10, %76 : i32
    %82 = vector.broadcast %81 : i32 to vector<8x512xi32>
    %83 = arith.addi %82, %9 : vector<8x512xi32>
    %c4096_i32_24 = arith.constant 4096 : i32
    %84 = vector.broadcast %c4096_i32_24 : i32 to vector<8x512xi32>
    %85 = arith.cmpi slt, %83, %84 : vector<8x512xi32>
    %86 = arith.andi %8, %85 : vector<8x512xi1>
    %cst_25 = arith.constant 1.000000e+00 : f32
    %87 = vector.broadcast %cst_25 : f32 to vector<8x512xf32>
    %88 = arith.select %86, %80, %87 : vector<8x512xi1>, vector<8x512xf32>
    %89 = arith.divf %78, %88 : vector<8x512xf32>
    %cst_26 = arith.constant 2.000000e+00 : f32
    %90 = vector.broadcast %cst_26 : f32 to vector<8x512xf32>
    %91 = arith.subf %89, %90 : vector<8x512xf32>
    %92 = math.absf %91 : vector<8x512xf32>
    %cst_27 = arith.constant 0.000000e+00 : f32
    %93 = vector.broadcast %cst_27 : f32 to vector<8x512xf32>
    %94 = arith.select %86, %92, %93 : vector<8x512xi1>, vector<8x512xf32>
    %95 = arith.addf %74, %94 : vector<8x512xf32>
    %c4_i32 = arith.constant 4 : i32
    %c512_i32_28 = arith.constant 512 : i32
    %96 = arith.muli %c4_i32, %c512_i32_28 : i32
    %97 = tpu.assume_multiple %96, 512 : i32
    %c0_29 = arith.constant 0 : index
    %98 = arith.index_cast %97 : i32 to index
    %99 = vector.load %arg2[%c0_29, %98] : memref<8x4096xf32, #tpu.memory_space<vmem>>, vector<8x512xf32>
    %c0_30 = arith.constant 0 : index
    %100 = arith.index_cast %97 : i32 to index
    %101 = vector.load %arg3[%c0_30, %100] : memref<8x4096xf32, #tpu.memory_space<vmem>>, vector<8x512xf32>
    %102 = arith.addi %10, %97 : i32
    %103 = vector.broadcast %102 : i32 to vector<8x512xi32>
    %104 = arith.addi %103, %9 : vector<8x512xi32>
    %c4096_i32_31 = arith.constant 4096 : i32
    %105 = vector.broadcast %c4096_i32_31 : i32 to vector<8x512xi32>
    %106 = arith.cmpi slt, %104, %105 : vector<8x512xi32>
    %107 = arith.andi %8, %106 : vector<8x512xi1>
    %cst_32 = arith.constant 1.000000e+00 : f32
    %108 = vector.broadcast %cst_32 : f32 to vector<8x512xf32>
    %109 = arith.select %107, %101, %108 : vector<8x512xi1>, vector<8x512xf32>
    %110 = arith.divf %99, %109 : vector<8x512xf32>
    %cst_33 = arith.constant 2.000000e+00 : f32
    %111 = vector.broadcast %cst_33 : f32 to vector<8x512xf32>
    %112 = arith.subf %110, %111 : vector<8x512xf32>
    %113 = math.absf %112 : vector<8x512xf32>
    %cst_34 = arith.constant 0.000000e+00 : f32
    %114 = vector.broadcast %cst_34 : f32 to vector<8x512xf32>
    %115 = arith.select %107, %113, %114 : vector<8x512xi1>, vector<8x512xf32>
    %116 = arith.addf %95, %115 : vector<8x512xf32>
    %c5_i32 = arith.constant 5 : i32
    %c512_i32_35 = arith.constant 512 : i32
    %117 = arith.muli %c5_i32, %c512_i32_35 : i32
    %118 = tpu.assume_multiple %117, 512 : i32
    %c0_36 = arith.constant 0 : index
    %119 = arith.index_cast %118 : i32 to index
    %120 = vector.load %arg2[%c0_36, %119] : memref<8x4096xf32, #tpu.memory_space<vmem>>, vector<8x512xf32>
    %c0_37 = arith.constant 0 : index
    %121 = arith.index_cast %118 : i32 to index
    %122 = vector.load %arg3[%c0_37, %121] : memref<8x4096xf32, #tpu.memory_space<vmem>>, vector<8x512xf32>
    %123 = arith.addi %10, %118 : i32
    %124 = vector.broadcast %123 : i32 to vector<8x512xi32>
    %125 = arith.addi %124, %9 : vector<8x512xi32>
    %c4096_i32_38 = arith.constant 4096 : i32
    %126 = vector.broadcast %c4096_i32_38 : i32 to vector<8x512xi32>
    %127 = arith.cmpi slt, %125, %126 : vector<8x512xi32>
    %128 = arith.andi %8, %127 : vector<8x512xi1>
    %cst_39 = arith.constant 1.000000e+00 : f32
    %129 = vector.broadcast %cst_39 : f32 to vector<8x512xf32>
    %130 = arith.select %128, %122, %129 : vector<8x512xi1>, vector<8x512xf32>
    %131 = arith.divf %120, %130 : vector<8x512xf32>
    %cst_40 = arith.constant 2.000000e+00 : f32
    %132 = vector.broadcast %cst_40 : f32 to vector<8x512xf32>
    %133 = arith.subf %131, %132 : vector<8x512xf32>
    %134 = math.absf %133 : vector<8x512xf32>
    %cst_41 = arith.constant 0.000000e+00 : f32
    %135 = vector.broadcast %cst_41 : f32 to vector<8x512xf32>
    %136 = arith.select %128, %134, %135 : vector<8x512xi1>, vector<8x512xf32>
    %137 = arith.addf %116, %136 : vector<8x512xf32>
    %c6_i32 = arith.constant 6 : i32
    %c512_i32_42 = arith.constant 512 : i32
    %138 = arith.muli %c6_i32, %c512_i32_42 : i32
    %139 = tpu.assume_multiple %138, 512 : i32
    %c0_43 = arith.constant 0 : index
    %140 = arith.index_cast %139 : i32 to index
    %141 = vector.load %arg2[%c0_43, %140] : memref<8x4096xf32, #tpu.memory_space<vmem>>, vector<8x512xf32>
    %c0_44 = arith.constant 0 : index
    %142 = arith.index_cast %139 : i32 to index
    %143 = vector.load %arg3[%c0_44, %142] : memref<8x4096xf32, #tpu.memory_space<vmem>>, vector<8x512xf32>
    %144 = arith.addi %10, %139 : i32
    %145 = vector.broadcast %144 : i32 to vector<8x512xi32>
    %146 = arith.addi %145, %9 : vector<8x512xi32>
    %c4096_i32_45 = arith.constant 4096 : i32
    %147 = vector.broadcast %c4096_i32_45 : i32 to vector<8x512xi32>
    %148 = arith.cmpi slt, %146, %147 : vector<8x512xi32>
    %149 = arith.andi %8, %148 : vector<8x512xi1>
    %cst_46 = arith.constant 1.000000e+00 : f32
    %150 = vector.broadcast %cst_46 : f32 to vector<8x512xf32>
    %151 = arith.select %149, %143, %150 : vector<8x512xi1>, vector<8x512xf32>
    %152 = arith.divf %141, %151 : vector<8x512xf32>
    %cst_47 = arith.constant 2.000000e+00 : f32
    %153 = vector.broadcast %cst_47 : f32 to vector<8x512xf32>
    %154 = arith.subf %152, %153 : vector<8x512xf32>
    %155 = math.absf %154 : vector<8x512xf32>
    %cst_48 = arith.constant 0.000000e+00 : f32
    %156 = vector.broadcast %cst_48 : f32 to vector<8x512xf32>
    %157 = arith.select %149, %155, %156 : vector<8x512xi1>, vector<8x512xf32>
    %158 = arith.addf %137, %157 : vector<8x512xf32>
    %c7_i32 = arith.constant 7 : i32
    %c512_i32_49 = arith.constant 512 : i32
    %159 = arith.muli %c7_i32, %c512_i32_49 : i32
    %160 = tpu.assume_multiple %159, 512 : i32
    %c0_50 = arith.constant 0 : index
    %161 = arith.index_cast %160 : i32 to index
    %162 = vector.load %arg2[%c0_50, %161] : memref<8x4096xf32, #tpu.memory_space<vmem>>, vector<8x512xf32>
    %c0_51 = arith.constant 0 : index
    %163 = arith.index_cast %160 : i32 to index
    %164 = vector.load %arg3[%c0_51, %163] : memref<8x4096xf32, #tpu.memory_space<vmem>>, vector<8x512xf32>
    %165 = arith.addi %10, %160 : i32
    %166 = vector.broadcast %165 : i32 to vector<8x512xi32>
    %167 = arith.addi %166, %9 : vector<8x512xi32>
    %c4096_i32_52 = arith.constant 4096 : i32
    %168 = vector.broadcast %c4096_i32_52 : i32 to vector<8x512xi32>
    %169 = arith.cmpi slt, %167, %168 : vector<8x512xi32>
    %170 = arith.andi %8, %169 : vector<8x512xi1>
    %cst_53 = arith.constant 1.000000e+00 : f32
    %171 = vector.broadcast %cst_53 : f32 to vector<8x512xf32>
    %172 = arith.select %170, %164, %171 : vector<8x512xi1>, vector<8x512xf32>
    %173 = arith.divf %162, %172 : vector<8x512xf32>
    %cst_54 = arith.constant 2.000000e+00 : f32
    %174 = vector.broadcast %cst_54 : f32 to vector<8x512xf32>
    %175 = arith.subf %173, %174 : vector<8x512xf32>
    %176 = math.absf %175 : vector<8x512xf32>
    %cst_55 = arith.constant 0.000000e+00 : f32
    %177 = vector.broadcast %cst_55 : f32 to vector<8x512xf32>
    %178 = arith.select %170, %176, %177 : vector<8x512xi1>, vector<8x512xf32>
    %179 = arith.addf %158, %178 : vector<8x512xf32>
    %c8_i32_56 = arith.constant 8 : i32
    %c0_57 = arith.constant 0 : index
    %c0_58 = arith.constant 0 : index
    %180 = vector.load %arg4[%c0_57, %c0_58] : memref<8x1xf32, #tpu.memory_space<vmem>>, vector<8x1xf32>
    %cst_59 = arith.constant dense<0.000000e+00> : vector<8xf32>
    %181 = vector.multi_reduction <add>, %179, %cst_59 [1] : vector<8x512xf32> to vector<8xf32>
    %182 = vector.shape_cast %181 : vector<8xf32> to vector<8x1xf32>
    %183 = arith.addf %180, %182 : vector<8x1xf32>
    %c0_60 = arith.constant 0 : index
    %c0_61 = arith.constant 0 : index
    %184 = vector.load %arg4[%c0_60, %c0_61] : memref<8x1xf32, #tpu.memory_space<vmem>>, vector<8x1xf32>
    tpu.vector_store %arg4[%c0_60, %c0_61], %183 {strides = array<i32>} : memref<8x1xf32, #tpu.memory_space<vmem>>, vector<8x1xf32>,
    %c0_i32_62 = arith.constant 0 : i32
    %185 = arith.cmpi eq, %arg1, %c0_i32_62 : i32
    %186 = arith.extui %185 : i1 to i32
    %c0_i32_63 = arith.constant 0 : i32
    %187 = arith.cmpi ne, %186, %c0_i32_63 : i32
    scf.if %187 {
      %c0_64 = arith.constant 0 : index
      %c0_65 = arith.constant 0 : index
      %188 = vector.load %arg4[%c0_64, %c0_65] : memref<8x1xf32, #tpu.memory_space<vmem>>, vector<8x1xf32>
      %cst_66 = arith.constant 2.44140625E-4 : f32
      %189 = vector.broadcast %cst_66 : f32 to vector<8x1xf32>
      %190 = arith.mulf %188, %189 : vector<8x1xf32>
      %c0_67 = arith.constant 0 : index
      %c0_68 = arith.constant 0 : index
      %191 = vector.load %arg4[%c0_67, %c0_68] : memref<8x1xf32, #tpu.memory_space<vmem>>, vector<8x1xf32>
      tpu.vector_store %arg4[%c0_67, %c0_68], %190 {strides = array<i32>} : memref<8x1xf32, #tpu.memory_space<vmem>>, vector<8x1xf32>,
    } else {
    }
    return
  }
  func.func @transform_0(%arg0: i32, %arg1: i32) -> (i32, i32) {
    %c0_i32 = arith.constant 0 : i32
    return %arg0, %arg1 : i32, i32
  }
  func.func @transform_1(%arg0: i32, %arg1: i32) -> (i32, i32) {
    %c0_i32 = arith.constant 0 : i32
    return %arg0, %arg1 : i32, i32
  }
  func.func @transform_2(%arg0: i32, %arg1: i32) -> (i32, i32) {
    %c0_i32 = arith.constant 0 : i32
    %c0_i32_0 = arith.constant 0 : i32
    return %arg0, %c0_i32 : i32, i32
  }
}

</mosaic_0001>

<bundles_post_ra>
// kernel: tpu_custom_call.1
= control target key start
LH: loop header
LB: loop body
LE: loop exit
PB: predicated region body
PF: predicated region fallthrough
CT: control target
= control target key end

     0   :  { %7 = vsyncpa [#allocation3], 0  ;;  %s1473_s0 = inlined_call_operand.hbm [shape: f32[31,4096], index: 0, kind: input, shape index: {}]   ;;  %s1474_s1 = inlined_call_operand.hbm [shape: f32[31,4096], index: 1, kind: input, shape index: {}]   ;;  %s1475_s2 = inlined_call_operand.vmem [shape: f32[31,1], index: 2, kind: output, shape index: {}]  }
   0x1   :  { %9 = vsyncpa [#allocation3 + $0x1], 0 }
   0x2   :  { %10 = vsyncpa [#allocation5], 0 }
   0x3   :  { %12 = vsyncpa [#allocation5 + $0x1], 0  ;;  %s1131_s9 = smov 0   ;;  %s1133_s10 = smov 0  }
   0x4   :  { %s1135_s11 = smov 0   ;;  %s1137_s12 = smov 0  }
   0x5   :  { %s1139_s13 = smov 0   ;;  %s1141_s14 = smov 0  }
   0x6 LB: > { %s769_s15 = sadd.s32 4294967295, %s1111_s14   ;;  %s30_s16 = sadd.s32 1, %s1107_s13  ;;  %s1111_s14 = sphi %s1141_s14, %s18_s14   ;;  %s1107_s13 = sphi %s1139_s13, %s1484_s13   ;;  %s1103_s12 = sphi %s1137_s12, %s1483_s12   ;;  %s1099_s11 = sphi %s1135_s11, %s1482_s11   ;;  %s1095_s10 = sphi %s1133_s10, %s1481_s10   ;;  %s1091_s9 = sphi %s1131_s9, %s1480_s9  }
   0x7   : > { %p32_p0 = scmp.ge.s32.totalorder %s30_s16, 4  ;;  %s39_s17 = sadd.s32 1, %s1099_s11 }
   0x8   : > { %p46_p1 = scmp.ne.s32.totalorder %s1099_s11, %s1095_s10  ;;  %p47_p2 = scmp.eq.s32.totalorder %s1111_s14, 0 }
   0x9   : > { %s1486_s16 = smov (%p32_p0, %s30_s16), 0  ;;  %p52_p4 = scmp.ne.s32.totalorder %s1095_s10, %s1091_s9 }
   0xa   : > { %p1167_p3 = por %p47_p2, %p46_p1  ;;  %s34_s19 = ssub.s32 %s1107_s13, %s1486_s16 }
   0xb   : > { %p53_p5 = scmp.eq.s32.totalorder %s769_s15, 0  ;;  %p37_p6 = scmp.eq.s32.totalorder %s34_s19, 0 }
   0xc   : > { %p887_p8 = scmp.lt.s32.totalorder %s1111_s14, 4  ;;  %s1183_s22 = sand.u32 1, %s1099_s11  }
   0xd   : > { %p1174_p7 = por %p53_p5, %p52_p4  ;;  %s874_s23 = sshll.u32 %s1107_s13, 12 }
   0xe   : > { %s1180_s21 = scalar_select %p37_p6, %s1099_s11, %s39_s17  }
   0xf   : > { %s773_s24 = sshll.u32 %s1183_s22, 8  ;;  %s142_s27 = scalar_lea.hbm %s1473_s0, %s874_s23 }
  0x10   : > { %s134_s28 = scalar_lea.vmem [#allocation2], %s773_s24  ;;  %p1192_p9 = pnand %p887_p8, %p1167_p3 }
  0x11   : > { %s144_s29 = sshll.u32 %s134_s28, 4  ;;  %p779_p10 = scmp.ge.s32.totalorder %s1111_s14, 1  ;;  %s145_s29 = int_to_ptr.vmem [resolvable:$true] %s144_s29 }
  0x12   : > { %p170_p11 = scmp.lt.s32.totalorder %s1111_s14, 5  ;;  %s131_s3 = scalar_lea.sflag [#allocation3], %s1183_s22 }
  0x13   : > { %p1003_p12 = pneg %p1192_p9  ;;  %s1014_s4 = scalar_lea.vmem %s145_s29, 4096 }
  0x14   : > { %p1015_p13 = scmp.ne.s32.totalorder %s145_s29, %s1014_s4  ;;  %s1113_s5 = smov [#allocation2]  }
  0x15   : > { %s1019_s6 = sshll.u32 %s1113_s5, 4  ;;  %s1020_s6 = int_to_ptr.vmem [resolvable:$false] %s1019_s6 }
  0x16   : > { %p1017_p0 = pnand %p1015_p13, %p1003_p12  ;;  %s1021_s7 = scalar_lea.vmem %s1020_s6, 8192 }
  0x17   : > { %p1022_p2 = scmp.lt.s32.totalorder %s145_s29, %s1020_s6  ;;  %p1023_p3 = scmp.lt.s32.totalorder %s1021_s7, %s1014_s4 }
  0x18   : > { %p1018_p1 = pneg %p1017_p0 }
  0x19   : > { %p1024_p4 = por %p1023_p3, %p1022_p2 }
  0x1b   : > { %p1025_p5 = pnand %p1024_p4, %p1018_p1 }
  0x1d   : > { %1028 = shalt.err (!%p1025_p5)
}
  0x1e   : > { %883 = dma.hbm_to_vmem [thread:$0]  (!%p1192_p9), %s142_s27, 4096, %s145_s29, %s131_s3  }
  0x1f   : > { %p1210_p6 = pnand %p779_p10, %p170_p11  ;;  %s163_s17 = scalar_lea.hbm %s1474_s1, %s874_s23 }
  0x20   : > { %s155_s18 = scalar_lea.vmem [#allocation4], %s773_s24  ;;  %s152_s25 = scalar_lea.sflag [#allocation5], %s1183_s22 }
  0x21   : > { %s165_s19 = sshll.u32 %s155_s18, 4  ;;  %s1114_s27 = smov [#allocation4]   ;;  %s166_s19 = int_to_ptr.vmem [resolvable:$true] %s165_s19 }
  0x22   : > { %s1042_s26 = scalar_lea.vmem %s166_s19, 4096  ;;  %s1047_s28 = sshll.u32 %s1114_s27, 4  ;;  %s1048_s28 = int_to_ptr.vmem [resolvable:$false] %s1047_s28 }
  0x23   : > { %p1043_p8 = scmp.ne.s32.totalorder %s166_s19, %s1042_s26  ;;  %s1049_s29 = scalar_lea.vmem %s1048_s28, 8192 }
  0x24   : > { %p1050_p10 = scmp.lt.s32.totalorder %s166_s19, %s1048_s28  ;;  %p1051_p11 = scmp.lt.s32.totalorder %s1049_s29, %s1042_s26 }
  0x25   : > { %p1045_p13 = pnand %p1043_p8, %p1003_p12 }
  0x26   : > { %p1052_p1 = por %p1051_p11, %p1050_p10 }
  0x27   : > { %p1046_p0 = pneg %p1045_p13 }
  0x29   : > { %p1053_p2 = pnand %p1052_p1, %p1046_p0 }
  0x2b   : > { %1056 = shalt.err (!%p1053_p2)
}
  0x2c   : > { %886 = dma.hbm_to_vmem [thread:$0]  (!%p1192_p9), %s163_s17, 4096, %s166_s19, %s152_s25  }
  0x2d   : > { %174 = sbr.rel (%p1210_p6) target bundleno = 281 (0x119), region = 28  ;;  %s176_s22 = sand.u32 (!%p1210_p6), 1, %s1095_s10  }
  0x2e   : > { %s780_s23 = sshll.u32 (!%p1210_p6), %s176_s22, 8  ;;  %s177_s24 = scalar_lea.sflag (!%p1210_p6), [#allocation3], %s176_s22 }
  0x2f   : > { %s1226_s3 = scalar_lea.vmem (!%p1210_p6), [#allocation2], %s780_s23 }
  0x32   : > { %1082 = dma.done.wait (%p1174_p7), %s177_s24, 4096  }
  0x33   : > { %1084 = vsyncadd (%p1174_p7), %s177_s24, 4294963200  ;;  %s186_s4 = scalar_lea.sflag [#allocation5], %s176_s22  ;;  %s1232_s5 = scalar_lea.vmem [#allocation4], %s780_s23 }
  0x34   : > { %1086 = dma.done.wait (%p1174_p7), %s186_s4, 4096  }
  0x35   : > { %1088 = vsyncadd (%p1174_p7), %s186_s4, 4294963200  ;;  %p216_p9 = scmp.lt.s32.totalorder %s1103_s12, 3  ;;  %s783_s30 = sshll.u32 %s1103_s12, 3  ;;  %v227_v0 = vlaneseq  ;;  %vm224_vm0 = vcmask 7168   ;;  %v1115_v4 = vmov 0.0   ;;  %v242_v5 = vld [vmem:[%s1232_s5] sm:$0xff] }
  0x36   : > { %v229_v1 = vstv %s783_s30  ;;  %v243_v6 = vld [vmem:[%s1232_s5 + $0x8] sm:$0xff]  ;;  %v244_v7 = vld [vmem:[%s1232_s5 + $0x10] sm:$0xff]  ;;  %v245_v8 = vld [vmem:[%s1232_s5 + $0x18] sm:$0xff] }
  0x37   : > { %s1488_s12 = smov (!%p216_p9, %s1103_s12), 3  ;;  %v228_v2 = vshrl.u32 %v227_v0, 7  ;;  %v792_v13 = vld [vmem:[%s1232_s5 + $0x20] sm:$0xff]  ;;  %v793_v14 = vld [vmem:[%s1232_s5 + $0x28] sm:$0xff]  ;;  %v794_v15 = vld [vmem:[%s1232_s5 + $0x30] sm:$0xff] }
  0x38   : > { %s782_s6 = sshll.u32 %s1488_s12, 3  ;;  %v795_v16 = vld [vmem:[%s1232_s5 + $0x38] sm:$0xff]  ;;  %v804_v21 = vld [vmem:[%s1232_s5 + $0x40] sm:$0xff]  ;;  %v805_v22 = vld [vmem:[%s1232_s5 + $0x48] sm:$0xff] }
  0x39   : > { %v1241_v3 = vadd.s32 %v229_v1, %v228_v2  ;;  %s1246_s8 = scalar_lea.vmem %s1475_s2, %s782_s6  ;;  %v806_v23 = vld [vmem:[%s1232_s5 + $0x50] sm:$0xff]  ;;  %v807_v26 = vld [vmem:[%s1232_s5 + $0x58] sm:$0xff]  ;;  %v816_v28 = vld [vmem:[%s1232_s5 + $0x60] sm:$0xff] }
  0x3a   : > { %225 = vst.msk [vmem:[%s1246_s8] sm:$0xff] %vm224_vm0, %v1115_v4  ;;  %v817_v31 = vld [vmem:[%s1232_s5 + $0x68] sm:$0xff]  ;;  %v818_v33 = vld [vmem:[%s1232_s5 + $0x70] sm:$0xff]  ;;  %v238_v37 = vld [vmem:[%s1226_s3] sm:$0xff] }
  0x3b   : > { %vm231_vm1 = vcmp.lt.s32.totalorder %v1241_v3, 31  ;;  %v819_v38 = vld [vmem:[%s1232_s5 + $0x78] sm:$0xff]  ;;  %v239_v41 = vld [vmem:[%s1226_s3 + $0x8] sm:$0xff]  ;;  %v828_v43 = vld [vmem:[%s1232_s5 + $0x80] sm:$0xff] }
  0x3c   : > { %v260_v9 = vsel %vm231_vm1, %v242_v5, 1.0  ;;  %v261_v10 = vsel %vm231_vm1, %v243_v6, 1.0  ;;  %v262_v11 = vsel %vm231_vm1, %v244_v7, 1.0  ;;  %v263_v12 = vsel %vm231_vm1, %v245_v8, 1.0  ;;  %v829_v44 = vld [vmem:[%s1232_s5 + $0x88] sm:$0xff]  ;;  %v240_v46 = vld [vmem:[%s1226_s3 + $0x10] sm:$0xff] }
  0x3d   : > { %937 = vrcp.f32 %v260_v9  ;;  %v312_v17 = vsel %vm231_vm1, %v792_v13, 1.0  ;;  %v313_v18 = vsel %vm231_vm1, %v793_v14, 1.0  ;;  %v314_v19 = vsel %vm231_vm1, %v794_v15, 1.0  ;;  %v241_v47 = vld [vmem:[%s1226_s3 + $0x18] sm:$0xff]  ;;  %v830_v48 = vld [vmem:[%s1232_s5 + $0x90] sm:$0xff]  ;;  %v788_v50 = vld [vmem:[%s1226_s3 + $0x20] sm:$0xff] }
  0x3e   : > { %939 = vrcp.f32 %v261_v10  ;;  %v315_v20 = vsel %vm231_vm1, %v795_v16, 1.0  ;;  %v364_v24 = vsel %vm231_vm1, %v804_v21, 1.0  ;;  %v365_v25 = vsel %vm231_vm1, %v805_v22, 1.0  ;;  %v789_v51 = vld [vmem:[%s1226_s3 + $0x28] sm:$0xff]  ;;  %v790_v52 = vld [vmem:[%s1226_s3 + $0x30] sm:$0xff]  ;;  %v791_v56 = vld [vmem:[%s1226_s3 + $0x38] sm:$0xff] }
  0x3f   : > { %941 = vrcp.f32 %v262_v11  ;;  %v366_v27 = vsel %vm231_vm1, %v806_v23, 1.0  ;;  %v367_v30 = vsel %vm231_vm1, %v807_v26, 1.0  ;;  %v416_v35 = vsel %vm231_vm1, %v816_v28, 1.0  ;;  %v831_v57 = vld [vmem:[%s1232_s5 + $0x98] sm:$0xff]  ;;  %v800_v8 = vld [vmem:[%s1226_s3 + $0x40] sm:$0xff]  ;;  %v841_v10 = vld [vmem:[%s1232_s5 + $0xa8] sm:$0xff] }
  0x40   : > { %943 = vrcp.f32 %v263_v12  ;;  %v417_v39 = vsel %vm231_vm1, %v817_v31, 1.0  ;;  %v418_v42 = vsel %vm231_vm1, %v818_v33, 1.0  ;;  %v419_v53 = vsel %vm231_vm1, %v819_v38, 1.0  ;;  %v840_v9 = vld [vmem:[%s1232_s5 + $0xa0] sm:$0xff]  ;;  %v801_v15 = vld [vmem:[%s1226_s3 + $0x48] sm:$0xff]  ;;  %v842_v16 = vld [vmem:[%s1232_s5 + $0xb0] sm:$0xff] }
  0x41   : > { %945 = vrcp.f32 %v312_v17  ;;  %v468_v58 = vsel %vm231_vm1, %v828_v43, 1.0  ;;  %v469_v59 = vsel %vm231_vm1, %v829_v44, 1.0  ;;  %v470_v63 = vsel %vm231_vm1, %v830_v48, 1.0  ;;  %v802_v21 = vld [vmem:[%s1226_s3 + $0x50] sm:$0xff]  ;;  %v803_v23 = vld [vmem:[%s1226_s3 + $0x58] sm:$0xff]  ;;  %v852_v31 = vld [vmem:[%s1232_s5 + $0xc0] sm:$0xff] }
  0x42   : > { %947 = vrcp.f32 %v313_v18  ;;  %v471_v5 = vsel %vm231_vm1, %v831_v57, 1.0  ;;  %v520_v26 = vsel %vm231_vm1, %v840_v9, 1.0  ;;  %v854_v33 = vld [vmem:[%s1232_s5 + $0xd0] sm:$0xff] }
  0x43   : > { %949 = vrcp.f32 %v314_v19 }
  0x44   : > { %951 = vrcp.f32 %v315_v20 }
  0x45   : > { %953 = vrcp.f32 %v364_v24 }
  0x46   : > { %955 = vrcp.f32 %v365_v25  ;;  %v843_v25 = vld [vmem:[%s1232_s5 + $0xb8] sm:$0xff] }
  0x47   : > { %957 = vrcp.f32 %v366_v27  ;;  %v521_v27 = vsel %vm231_vm1, %v841_v10, 1.0 }
  0x48   : > { %959 = vrcp.f32 %v367_v30  ;;  %v1333_v30 = vsel %vm231_vm1, %v842_v16, 1.0 }
  0x49   : > { %961 = vrcp.f32 %v416_v35 }
  0x4a   : > { %v938_v29 = vpop.eup %937  ;;  %963 = vrcp.f32 %v417_v39 }
  0x4b   : > { %v940_v32 = vpop.eup %939  ;;  %v265_v55 = vmul.f32 %v938_v29, %v238_v37  ;;  %965 = vrcp.f32 %v418_v42 }
  0x4c   : > { %v942_v34 = vpop.eup %941  ;;  %v267_v60 = vmul.f32 %v940_v32, %v239_v41  ;;  %967 = vrcp.f32 %v419_v53  ;;  %v853_v32 = vld [vmem:[%s1232_s5 + $0xc8] sm:$0xff]  ;;  %v1348_v53 = vsel %vm231_vm1, %v854_v33, 1.0 }
  0x4d   : > { %v944_v36 = vpop.eup %943  ;;  %v269_v61 = vmul.f32 %v942_v34, %v240_v46  ;;  %969 = vrcp.f32 %v468_v58  ;;  %v784_v7 = vadd.f32 -2.0, %v265_v55  ;;  %v572_v46 = vsel %vm231_vm1, %v852_v31, 1.0  ;;  %v827_v31 = vld [vmem:[%s1226_s3 + $0x98] sm:$0xff] }
  0x4e   : > { %v946_v40 = vpop.eup %945  ;;  %v271_v62 = vmul.f32 %v944_v36, %v241_v47  ;;  %971 = vrcp.f32 %v469_v59  ;;  %v785_v12 = vadd.f32 -2.0, %v267_v60  ;;  %v814_v59 = vld [vmem:[%s1226_s3 + $0x70] sm:$0xff]  ;;  %v855_v60 = vld [vmem:[%s1232_s5 + $0xd8] sm:$0xff] }
  0x4f   : > { %v948_v45 = vpop.eup %947  ;;  %v317_v0 = vmul.f32 %v946_v40, %v788_v50  ;;  %v786_v13 = vadd.f32 -2.0, %v269_v61  ;;  %973 = vrcp.f32 %v470_v63  ;;  %v276_v28 = vand.u32 2147483647, %v784_v7  ;;  %v812_v50 = vld [vmem:[%s1226_s3 + $0x60] sm:$0xff] }
  0x50   : > { %v950_v49 = vpop.eup %949  ;;  %v319_v1 = vmul.f32 %v948_v45, %v789_v51  ;;  %v787_v14 = vadd.f32 -2.0, %v271_v62  ;;  %975 = vrcp.f32 %v471_v5  ;;  %v277_v35 = vand.u32 2147483647, %v785_v12  ;;  %v813_v51 = vld [vmem:[%s1226_s3 + $0x68] sm:$0xff]  ;;  %v815_v5 = vld [vmem:[%s1226_s3 + $0x78] sm:$0xff] }
  0x51   : > { %v952_v54 = vpop.eup %951  ;;  %v321_v2 = vmul.f32 %v950_v49, %v790_v52  ;;  %v796_v18 = vadd.f32 -2.0, %v317_v0  ;;  %v278_v36 = vand.u32 2147483647, %v786_v13  ;;  %v523_v45 = vsel %vm231_vm1, %v843_v25, 1.0 }
  0x52   : > { %v323_v4 = vmul.f32 %v952_v54, %v791_v56  ;;  %v954_v6 = vpop.eup %953  ;;  %v797_v19 = vadd.f32 -2.0, %v319_v1  ;;  %v279_v37 = vand.u32 2147483647, %v787_v14  ;;  %v573_v52 = vsel %vm231_vm1, %v853_v32, 1.0 }
  0x53   : > { %v956_v11 = vpop.eup %955  ;;  %v798_v20 = vadd.f32 -2.0, %v321_v2  ;;  %v369_v24 = vmul.f32 %v954_v6, %v800_v8  ;;  %v328_v39 = vand.u32 2147483647, %v796_v18  ;;  %v280_v55 = vsel %vm231_vm1, %v276_v28, 0.0 }
  0x54   : > { %v958_v17 = vpop.eup %957  ;;  %v799_v22 = vadd.f32 -2.0, %v323_v4  ;;  %v371_v29 = vmul.f32 %v956_v11, %v801_v15  ;;  %v329_v40 = vand.u32 2147483647, %v797_v19  ;;  %v281_v56 = vsel %vm231_vm1, %v277_v35, 0.0  ;;  %v864_v35 = vld [vmem:[%s1232_s5 + $0xe0] sm:$0xff] }
  0x55   : > { %v960_v34 = vpop.eup %959  ;;  %v373_v38 = vmul.f32 %v958_v17, %v802_v21  ;;  %v330_v41 = vand.u32 2147483647, %v798_v20  ;;  %v808_v44 = vadd.f32 -2.0, %v369_v24  ;;  %v282_v57 = vsel %vm231_vm1, %v278_v36, 0.0  ;;  %v824_v17 = vld [vmem:[%s1226_s3 + $0x80] sm:$0xff] }
  0x56   : > { %v962_v42 = vpop.eup %961  ;;  %v331_v43 = vand.u32 2147483647, %v799_v22  ;;  %v375_v48 = vmul.f32 %v960_v34, %v803_v23  ;;  %v809_v49 = vadd.f32 -2.0, %v371_v29  ;;  %v283_v61 = vsel %vm231_vm1, %v279_v37, 0.0  ;;  %v825_v22 = vld [vmem:[%s1226_s3 + $0x88] sm:$0xff]  ;;  %v826_v23 = vld [vmem:[%s1226_s3 + $0x90] sm:$0xff] }
  0x57   : > { %v964_v47 = vpop.eup %963  ;;  %v810_v58 = vadd.f32 -2.0, %v373_v38  ;;  %v332_v62 = vsel %vm231_vm1, %v328_v39, 0.0  ;;  %v333_v63 = vsel %vm231_vm1, %v329_v40, 0.0  ;;  %v334_v0 = vsel %vm231_vm1, %v330_v41, 0.0  ;;  %v865_v38 = vld [vmem:[%s1232_s5 + $0xe8] sm:$0xff] }
  0x58   : > { %v966_v54 = vpop.eup %965  ;;  %v335_v2 = vsel %vm231_vm1, %v331_v43, 0.0  ;;  %v380_v4 = vand.u32 2147483647, %v808_v44  ;;  %v421_v6 = vmul.f32 %v962_v42, %v812_v50  ;;  %v423_v7 = vmul.f32 %v964_v47, %v813_v51  ;;  %v867_v44 = vld [vmem:[%s1232_s5 + $0xf8] sm:$0xff] }
  0x59   : > { %v968_v1 = vpop.eup %967  ;;  %v811_v9 = vadd.f32 -2.0, %v375_v48  ;;  %v381_v10 = vand.u32 2147483647, %v809_v49  ;;  %v425_v11 = vmul.f32 %v966_v54, %v814_v59  ;;  %v575_v12 = vsel %vm231_vm1, %v855_v60, 1.0 }
  0x5a   : > { %v970_v8 = vpop.eup %969  ;;  %v336_v14 = vadd.f32 %v332_v62, %v280_v55  ;;  %v337_v15 = vadd.f32 %v333_v63, %v281_v56  ;;  %v382_v16 = vand.u32 2147483647, %v810_v58  ;;  %977 = vrcp.f32 %v520_v26 }
  0x5b   : > { %v972_v13 = vpop.eup %971  ;;  %v338_v19 = vadd.f32 %v334_v0, %v282_v57  ;;  %v339_v20 = vadd.f32 %v335_v2, %v283_v61  ;;  %v427_v21 = vmul.f32 %v968_v1, %v815_v5  ;;  %979 = vrcp.f32 %v521_v27  ;;  %v836_v61 = vld [vmem:[%s1226_s3 + $0xa0] sm:$0xff]  ;;  %v837_v1 = vld [vmem:[%s1226_s3 + $0xa8] sm:$0xff] }
  0x5c   : > { %v974_v18 = vpop.eup %973  ;;  %v384_v25 = vsel %vm231_vm1, %v380_v4, 0.0  ;;  %v820_v28 = vadd.f32 -2.0, %v421_v6  ;;  %v821_v29 = vadd.f32 -2.0, %v423_v7  ;;  %981 = vrcp.f32 %v1333_v30  ;;  %v866_v30 = vld [vmem:[%s1232_s5 + $0xf0] sm:$0xff] }
  0x5d   : > { %v976_v24 = vpop.eup %975  ;;  %v383_v26 = vand.u32 2147483647, %v811_v9  ;;  %v385_v32 = vsel %vm231_vm1, %v381_v10, 0.0  ;;  %v822_v33 = vadd.f32 -2.0, %v425_v11  ;;  %v473_v34 = vmul.f32 %v970_v8, %v824_v17  ;;  %v838_v6 = vld [vmem:[%s1226_s3 + $0xb0] sm:$0xff] }
  0x5e   : > { %v386_v27 = vsel %vm231_vm1, %v382_v16, 0.0  ;;  %v475_v36 = vmul.f32 %v972_v13, %v825_v22  ;;  %v477_v37 = vmul.f32 %v974_v18, %v826_v23  ;;  %983 = vrcp.f32 %v523_v45 }
  0x5f   : > { %v388_v39 = vadd.f32 %v384_v25, %v336_v14  ;;  %v823_v40 = vadd.f32 -2.0, %v427_v21  ;;  %v479_v41 = vmul.f32 %v976_v24, %v827_v31  ;;  %985 = vrcp.f32 %v572_v46  ;;  %v848_v21 = vld [vmem:[%s1226_s3 + $0xc0] sm:$0xff] }
  0x60   : > { %v432_v42 = vand.u32 2147483647, %v820_v28  ;;  %v433_v43 = vand.u32 2147483647, %v821_v29  ;;  %987 = vrcp.f32 %v573_v52  ;;  %v624_v47 = vsel %vm231_vm1, %v864_v35, 1.0  ;;  %v849_v28 = vld [vmem:[%s1226_s3 + $0xc8] sm:$0xff] }
  0x61   : > { %v434_v48 = vand.u32 2147483647, %v822_v33  ;;  %v832_v49 = vadd.f32 -2.0, %v473_v34  ;;  %989 = vrcp.f32 %v1348_v53  ;;  %v625_v45 = vsel %vm231_vm1, %v865_v38, 1.0  ;;  %v850_v34 = vld [vmem:[%s1226_s3 + $0xd0] sm:$0xff]  ;;  %v851_v38 = vld [vmem:[%s1226_s3 + $0xd8] sm:$0xff] }
  0x62   : > { %v833_v50 = vadd.f32 -2.0, %v475_v36  ;;  %v834_v51 = vadd.f32 -2.0, %v477_v37  ;;  %991 = vrcp.f32 %v575_v12  ;;  %v626_v46 = vsel %vm231_vm1, %v866_v30, 1.0 }
  0x63   : > { %v387_v52 = vsel %vm231_vm1, %v383_v26, 0.0  ;;  %v835_v54 = vadd.f32 -2.0, %v479_v41  ;;  %v627_v55 = vsel %vm231_vm1, %v867_v44, 1.0  ;;  %993 = vrcp.f32 %v624_v47 }
  0x64   : > { %v389_v53 = vadd.f32 %v385_v32, %v337_v15  ;;  %v390_v56 = vadd.f32 %v386_v27, %v338_v19  ;;  %v435_v57 = vand.u32 2147483647, %v823_v40  ;;  %995 = vrcp.f32 %v625_v45  ;;  %v839_v15 = vld [vmem:[%s1226_s3 + $0xb8] sm:$0xff] }
  0x65   : > { %v436_v58 = vsel %vm231_vm1, %v432_v42, 0.0  ;;  %v437_v59 = vsel %vm231_vm1, %v433_v43, 0.0  ;;  %v484_v60 = vand.u32 2147483647, %v832_v49  ;;  %997 = vrcp.f32 %v626_v46 }
  0x66   : > { %v438_v62 = vsel %vm231_vm1, %v434_v48, 0.0  ;;  %v485_v63 = vand.u32 2147483647, %v833_v50  ;;  %v486_v0 = vand.u32 2147483647, %v834_v51  ;;  %999 = vrcp.f32 %v627_v55  ;;  %v860_v50 = vld [vmem:[%s1226_s3 + $0xe0] sm:$0xff] }
  0x67   : > { %v978_v2 = vpop.eup %977  ;;  %v391_v4 = vadd.f32 %v387_v52, %v339_v20  ;;  %v487_v5 = vand.u32 2147483647, %v835_v54  ;;  %v439_v8 = vsel %vm231_vm1, %v435_v57, 0.0  ;;  %v440_v9 = vadd.f32 %v436_v58, %v388_v39  ;;  %v861_v51 = vld [vmem:[%s1226_s3 + $0xe8] sm:$0xff] }
  0x68   : > { %v980_v7 = vpop.eup %979  ;;  %v525_v10 = vmul.f32 %v978_v2, %v836_v61  ;;  %v441_v12 = vadd.f32 %v437_v59, %v389_v53  ;;  %v442_v13 = vadd.f32 %v438_v62, %v390_v56  ;;  %v488_v14 = vsel %vm231_vm1, %v484_v60, 0.0  ;;  %v862_v61 = vld [vmem:[%s1226_s3 + $0xf0] sm:$0xff]  ;;  %v863_v62 = vld [vmem:[%s1226_s3 + $0xf8] sm:$0xff] }
  0x69   : > { %v982_v11 = vpop.eup %981  ;;  %v527_v16 = vmul.f32 %v980_v7, %v837_v1  ;;  %v489_v17 = vsel %vm231_vm1, %v485_v63, 0.0  ;;  %v490_v18 = vsel %vm231_vm1, %v486_v0, 0.0  ;;  %v443_v23 = vadd.f32 %v439_v8, %v391_v4 }
  0x6a   : > { %v529_v19 = vmul.f32 %v982_v11, %v838_v6  ;;  %v844_v20 = vadd.f32 -2.0, %v525_v10  ;;  %v491_v24 = vsel %vm231_vm1, %v487_v5, 0.0  ;;  %v492_v31 = vadd.f32 %v488_v14, %v440_v9 }
  0x6b   : > { %v984_v22 = vpop.eup %983  ;;  %v845_v25 = vadd.f32 -2.0, %v527_v16  ;;  %v493_v27 = vadd.f32 %v489_v17, %v441_v12  ;;  %v494_v36 = vadd.f32 %v490_v18, %v442_v13  ;;  %v495_v47 = vadd.f32 %v491_v24, %v443_v23 }
  0x6c   : > { %v986_v29 = vpop.eup %985  ;;  %v531_v26 = vmul.f32 %v984_v22, %v839_v15  ;;  %v846_v32 = vadd.f32 -2.0, %v529_v19  ;;  %v536_v33 = vand.u32 2147483647, %v844_v20 }
  0x6d   : > { %v988_v35 = vpop.eup %987  ;;  %v537_v37 = vand.u32 2147483647, %v845_v25  ;;  %v577_v39 = vmul.f32 %v986_v29, %v848_v21 }
  0x6e   : > { %v990_v40 = vpop.eup %989  ;;  %v847_v41 = vadd.f32 -2.0, %v531_v26  ;;  %v538_v30 = vand.u32 2147483647, %v846_v32  ;;  %v540_v42 = vsel %vm231_vm1, %v536_v33, 0.0  ;;  %v579_v43 = vmul.f32 %v988_v35, %v849_v28 }
  0x6f   : > { %v992_v44 = vpop.eup %991  ;;  %v541_v48 = vsel %vm231_vm1, %v537_v37, 0.0  ;;  %v581_v49 = vmul.f32 %v990_v40, %v850_v34  ;;  %v856_v45 = vadd.f32 -2.0, %v577_v39  ;;  %v544_v55 = vadd.f32 %v540_v42, %v492_v31 }
  0x70   : > { %v994_v46 = vpop.eup %993  ;;  %v539_v52 = vand.u32 2147483647, %v847_v41  ;;  %v542_v54 = vsel %vm231_vm1, %v538_v30, 0.0  ;;  %v583_v53 = vmul.f32 %v992_v44, %v851_v38  ;;  %v545_v57 = vadd.f32 %v541_v48, %v493_v27  ;;  %v652_v41 = vld [vmem:[%s1246_s8] sm:$0xff] }
  0x71   : > { %v996_v56 = vpop.eup %995  ;;  %v857_v58 = vadd.f32 -2.0, %v579_v43  ;;  %v858_v59 = vadd.f32 -2.0, %v581_v49  ;;  %v588_v60 = vand.u32 2147483647, %v856_v45  ;;  %v629_v2 = vmul.f32 %v994_v46, %v860_v50 }
  0x72   : > { %v998_v63 = vpop.eup %997  ;;  %v543_v0 = vsel %vm231_vm1, %v539_v52, 0.0  ;;  %v859_v1 = vadd.f32 -2.0, %v583_v53  ;;  %v631_v4 = vmul.f32 %v996_v56, %v861_v51  ;;  %v546_v6 = vadd.f32 %v542_v54, %v494_v36 }
  0x73   : > { %v1000_v5 = vpop.eup %999  ;;  %v589_v7 = vand.u32 2147483647, %v857_v58  ;;  %v590_v8 = vand.u32 2147483647, %v858_v59  ;;  %v592_v9 = vsel %vm231_vm1, %v588_v60, 0.0  ;;  %v547_v10 = vadd.f32 %v543_v0, %v495_v47 }
  0x74   : > { %v591_v11 = vand.u32 2147483647, %v859_v1  ;;  %v633_v12 = vmul.f32 %v998_v63, %v862_v61  ;;  %v635_v13 = vmul.f32 %v1000_v5, %v863_v62  ;;  %v868_v16 = vadd.f32 -2.0, %v629_v2 }
  0x75   : > { %v593_v14 = vsel %vm231_vm1, %v589_v7, 0.0  ;;  %v594_v15 = vsel %vm231_vm1, %v590_v8, 0.0  ;;  %v869_v17 = vadd.f32 -2.0, %v631_v4  ;;  %v596_v19 = vadd.f32 %v592_v9, %v544_v55 }
  0x76   : > { %v595_v18 = vsel %vm231_vm1, %v591_v11, 0.0  ;;  %v597_v20 = vadd.f32 %v593_v14, %v545_v57  ;;  %v870_v21 = vadd.f32 -2.0, %v633_v12  ;;  %v598_v22 = vadd.f32 %v594_v15, %v546_v6 }
  0x77   : > { %v871_v23 = vadd.f32 -2.0, %v635_v13  ;;  %v640_v24 = vand.u32 2147483647, %v868_v16  ;;  %v641_v25 = vand.u32 2147483647, %v869_v17  ;;  %v599_v28 = vadd.f32 %v595_v18, %v547_v10 }
  0x78   : > { %v642_v29 = vand.u32 2147483647, %v870_v21 }
  0x79   : > { %v643_v31 = vand.u32 2147483647, %v871_v23  ;;  %v644_v26 = vsel %vm231_vm1, %v640_v24, 0.0  ;;  %v645_v32 = vsel %vm231_vm1, %v641_v25, 0.0 }
  0x7a   : > { %v646_v33 = vsel %vm231_vm1, %v642_v29, 0.0  ;;  %v648_v34 = vadd.f32 %v644_v26, %v596_v19  ;;  %v649_v35 = vadd.f32 %v645_v32, %v597_v20 }
  0x7b   : > { %v647_v27 = vsel %vm231_vm1, %v643_v31, 0.0  ;;  %v650_v36 = vadd.f32 %v646_v33, %v598_v22 }
  0x7c   : > { %v651_v37 = vadd.f32 %v647_v27, %v599_v28  ;;  %v653_v38 = vadd.f32 %v649_v35, %v648_v34 }
  0x7e   : > { %v654_v39 = vadd.f32 %v653_v38, %v650_v36 }
  0x80   : > { %v655_v40 = vadd.f32 %v654_v39, %v651_v37 }
  0x82   : > { %656 = vadd.xlane.f32.xlu0 %v655_v40 }
 0x10b   : > { %v657_v30 = vpop.xlane.xlu0 %656 }
 0x10c   : > { %v658_v42 = vadd.f32 %v657_v30, %v652_v41 }
 0x10e   : > { %660 = vst.msk [vmem:[%s1246_s8] sm:$0xff] %vm224_vm0, %v658_v42 }
 0x115   : > { %v664_v43 = vld [vmem:[%s1246_s8] sm:$0xff] }
 0x116   : > { %v665_v44 = vmul.f32 0.00024414063, %v664_v43 }
 0x118   : > { %666 = vst.msk [vmem:[%s1246_s8] sm:$0xff] %vm224_vm0, %v665_v44 }
 0x119 PF: > { %s18_s14 = sadd.s32 1, %s1111_s14   ;;  %s1480_s9 = smov %s1095_s10 }
 0x11a   : > { %p15_p7 = scmp.ge.s32.totalorder %s18_s14, 6   ;;  %s1481_s10 = smov %s1099_s11 }
 0x11b   : > { %s1482_s11 = smov %s1180_s21  ;;  %s1483_s12 = smov %s1107_s13 }
 0x11c   : > { %s1484_s13 = smov %s1486_s16  ;;  %17 = sbr.rel (!%p15_p7) target bundleno = 6 (0x6), region = 103 }
 0x121   :  { %686 = vsyncpa [#allocation3], 1 }
 0x122   :  { %688 = vsyncpa [#allocation3 + $0x1], 1 }
 0x123   :  { %689 = vsyncpa [#allocation5], 1 }
 0x124   :  { %691 = vsyncpa [#allocation5 + $0x1], 1 }

</bundles_post_ra>
